<compile_context>
chip_gen: v7x
topology: tpu7x:2x2x1
jax: 0.10.0
libtpu: 0.0.40
codegen_flags: <defaults>
</compile_context>

<pallas_src>
import functools

import jax
import jax.numpy as jnp
import numpy as np
from jax import lax
from jax.experimental import pallas as pl
from jax.experimental.pallas import tpu as pltpu


def _round_up(x, m):
    return ((x + m - 1) // m) * m


# ----------------------------- kernels --------------------------------------


def _dense_relu_single_k(x_ref, w_ref, b_ref, o_ref, *, compute_dtype):
    # x_ref: (tm, K)   w_ref: (tn, K)   b_ref: (1, tn)   o_ref: (tm, tn)
    x = x_ref[...].astype(compute_dtype)
    w = w_ref[...].astype(compute_dtype)
    # x @ w.T on the MXU (contract K with K), f32 accumulation.
    acc = lax.dot_general(
        x, w,
        dimension_numbers=(((1,), (1,)), ((), ())),
        preferred_element_type=jnp.float32,
    )
    o_ref[...] = jnp.maximum(acc + b_ref[...], 0.0).astype(o_ref.dtype)


def _dense_relu_multi_k(x_ref, w_ref, b_ref, o_ref, *, compute_dtype):
    # Output block index is independent of k -> o_ref (f32) stays VMEM-resident
    # across the whole K reduction; accumulate into it directly (no scratch).
    k = pl.program_id(2)

    @pl.when(k == 0)
    def _():
        o_ref[...] = jnp.zeros_like(o_ref)

    o_ref[...] += lax.dot_general(
        x_ref[...].astype(compute_dtype),
        w_ref[...].astype(compute_dtype),
        dimension_numbers=(((1,), (1,)), ((), ())),
        preferred_element_type=jnp.float32,
    )

    @pl.when(k == pl.num_programs(2) - 1)
    def _():
        o_ref[...] = jnp.maximum(o_ref[...] + b_ref[...], 0.0)


# --------------------------- tile selection ----------------------------------

_TM_CAP = 512    # rows per tile (raise to 1024+ with vmem_limit_bytes for big-M v6e)
_TN_CAP = 512    # output features per tile (lane axis, multiple of 128)
_TK_CAP = 1024   # reduction block; a single full-K block when K <= cap


def _choose_m_tiling(M):
    Mp = _round_up(M, 8)
    if Mp <= _TM_CAP:
        return Mp, Mp
    for t in range(_TM_CAP, 7, -8):
        if Mp % t == 0:
            return t, Mp
    return 8, Mp


def _choose_n_tiling(N):
    Np = _round_up(N, 128)
    if Np <= _TN_CAP:
        return Np, Np
    for t in range(_TN_CAP, 127, -128):
        if Np % t == 0:
            return t, Np
    return 128, Np


def _choose_k_tiling(K):
    if K <= _TK_CAP:
        return K, K                      # single full-K block, no padding
    Kp = _round_up(K, 128)
    for t in range(_TK_CAP, 511, -128):  # largest divisor >= 512
        if Kp % t == 0:
            return t, Kp
    return 512, _round_up(K, 512)        # rare fallback: small zero-pad on K


# ------------------------------ wrapper ---------------------------------------


@functools.partial(jax.jit, static_argnames=("compute_dtype",))
def dense_relu_forward(hidden_states, weight, bias, *, compute_dtype=jnp.bfloat16):
    """relu(hidden_states @ weight.T + bias) — TransformerIntermediate.forward.

    hidden_states: (..., hidden_size)
    weight:        (intermediate_size, hidden_size)  # PyTorch nn.Linear layout,
                                                     # consumed as-is (no HBM transpose)
    bias:          (intermediate_size,)
    """
    *lead, K = hidden_states.shape
    N, K2 = weight.shape
    assert K2 == K, "weight hidden dim mismatch"
    out_dtype = hidden_states.dtype

    x2 = hidden_states.reshape(-1, K)      # flatten (batch, seq) -> M
    M = x2.shape[0]

    tm, Mp = _choose_m_tiling(M)
    tn, Np = _choose_n_tiling(N)
    tk, Kp = _choose_k_tiling(K)
    gm, gn, gk = Mp // tm, Np // tn, Kp // tk

    # Keep both TensorCores busy on v7x when the parallel grid collapses to 1.
    if gm * gn == 1 and Mp >= 16 and (Mp // 2) % 8 == 0:
        tm = Mp // 2
        gm = 2

    # Pad only when the chosen tiles require it (never for the usual shapes).
    if Mp != M or Kp != K:
        x2 = jnp.pad(x2, ((0, Mp - M), (0, Kp - K)))
    w = weight
    if Np != N or Kp != K:
        w = jnp.pad(w, ((0, Np - N), (0, Kp - K)))
    b2 = bias.reshape(1, N)
    if Np != N:
        b2 = jnp.pad(b2, ((0, 0), (0, Np - N)))

    if gk == 1:
        kernel = functools.partial(_dense_relu_single_k, compute_dtype=compute_dtype)
        grid = (gm, gn)
        in_specs = [
            pl.BlockSpec((tm, tk), lambda i, j: (i, 0)),   # activations (M, K)
            pl.BlockSpec((tn, tk), lambda i, j: (j, 0)),   # weight (N, K), native layout
            pl.BlockSpec((1, tn), lambda i, j: (0, j)),    # bias row
        ]
        out_specs = pl.BlockSpec((tm, tn), lambda i, j: (i, j))
        out_shape = jax.ShapeDtypeStruct((Mp, Np), out_dtype)
        dim_sem = ("parallel", "parallel")
    else:
        kernel = functools.partial(_dense_relu_multi_k, compute_dtype=compute_dtype)
        grid = (gm, gn, gk)
        in_specs = [
            pl.BlockSpec((tm, tk), lambda i, j, k: (i, k)),
            pl.BlockSpec((tn, tk), lambda i, j, k: (j, k)),
            pl.BlockSpec((1, tn), lambda i, j, k: (0, j)),
        ]
        out_specs = pl.BlockSpec((tm, tn), lambda i, j, k: (i, j))
        out_shape = jax.ShapeDtypeStruct((Mp, Np), jnp.float32)  # in-place f32 accumulator
        dim_sem = ("parallel", "parallel", "arbitrary")

    out = pl.pallas_call(
        kernel,
        out_shape=out_shape,
        grid_spec=pltpu.PrefetchScalarGridSpec(
            num_scalar_prefetch=0,
            grid=grid,
            in_specs=in_specs,
            out_specs=out_specs,
        ),
        compiler_params=pltpu.CompilerParams(dimension_semantics=dim_sem),
    )(x2, w, b2)

    if Mp != M or Np != N:
        out = out[:M, :N]
    out = out.astype(out_dtype)
    return out.reshape(*lead, N)


# ------------------------------- demo -----------------------------------------

if __name__ == "__main__":
    # Small shapes implied by the module: hidden_size=32, intermediate_size=4*32.
    batch, seq, hidden_size = 2, 8, 32
    intermediate_size = 4 * hidden_size  # 128

    key = jax.random.PRNGKey(0)
    k_x, k_w, k_b = jax.random.split(key, 3)

    hidden_states = jax.random.normal(k_x, (batch, seq, hidden_size), dtype=jnp.float32)
    weight = 0.1 * jax.random.normal(
        k_w, (intermediate_size, hidden_size), dtype=jnp.float32
    )
    bias = 0.1 * jax.random.normal(k_b, (intermediate_size,), dtype=jnp.float32)

    ref = jnp.maximum(jnp.einsum("bsh,ih->bsi", hidden_states, weight) + bias, 0.0)

    # Default (bf16 MXU operands, f32 accumulation) — production path.
    out = dense_relu_forward(hidden_states, weight, bias)
    out = jax.block_until_ready(out)
    np.testing.assert_allclose(np.asarray(out), np.asarray(ref), rtol=2e-2, atol=2e-2)

    # f32 validation path — should match the reference tightly.
    out_f32 = dense_relu_forward(hidden_states, weight, bias, compute_dtype=jnp.float32)
    out_f32 = jax.block_until_ready(out_f32)
    np.testing.assert_allclose(np.asarray(out_f32), np.asarray(ref), rtol=1e-5, atol=1e-5)

    assert out.shape == (batch, seq, intermediate_size)
    print("KERNEL_OK")
</pallas_src>

<mosaic_0001>
module attributes {stable_mosaic.version = 11 : i64} {
  func.func @_dense_relu_single_k(%arg0: i32, %arg1: i32, %arg2: memref<8x32xf32, #tpu.memory_space<vmem>>, %arg3: memref<128x32xf32, #tpu.memory_space<vmem>>, %arg4: memref<1x128xf32, #tpu.memory_space<vmem>>, %arg5: memref<8x128xf32, #tpu.memory_space<vmem>>) attributes {dimension_semantics = [#tpu.dimension_semantics<parallel>, #tpu.dimension_semantics<parallel>], iteration_bounds = array<i64: 2, 1>, scalar_prefetch = 0 : i64, scratch_operands = 0 : i64, tpu.core_type = #tpu.core_type<tc>, window_params = [{transform_indices = @transform_0, window_bounds = array<i64: 8, 32>}, {transform_indices = @transform_1, window_bounds = array<i64: 128, 32>}, {transform_indices = @transform_2, window_bounds = array<i64: 1, 128>}, {transform_indices = @transform_3, window_bounds = array<i64: 8, 128>}]} {
    %c0 = arith.constant 0 : index
    %c0_0 = arith.constant 0 : index
    %0 = vector.load %arg2[%c0, %c0_0] : memref<8x32xf32, #tpu.memory_space<vmem>>, vector<8x32xf32>
    %1 = arith.truncf %0 : vector<8x32xf32> to vector<8x32xbf16>
    %c0_1 = arith.constant 0 : index
    %c0_2 = arith.constant 0 : index
    %2 = vector.load %arg3[%c0_1, %c0_2] : memref<128x32xf32, #tpu.memory_space<vmem>>, vector<128x32xf32>
    %3 = arith.truncf %2 : vector<128x32xf32> to vector<128x32xbf16>
    %cst = arith.constant dense<0.000000e+00> : vector<8x128xf32>
    %4 = tpu.matmul %1, %3, %cst {dimension_numbers = #tpu.dot_dimension_numbers<[1], [1], [0], [0], [0, 0, 1, 0], [], []>} : vector<8x32xbf16>, vector<128x32xbf16>, vector<8x128xf32> -> vector<8x128xf32>
    %c0_3 = arith.constant 0 : index
    %c0_4 = arith.constant 0 : index
    %5 = vector.load %arg4[%c0_3, %c0_4] : memref<1x128xf32, #tpu.memory_space<vmem>>, vector<1x128xf32>
    %6 = vector.broadcast %5 : vector<1x128xf32> to vector<8x128xf32>
    %7 = arith.addf %4, %6 : vector<8x128xf32>
    %cst_5 = arith.constant 0.000000e+00 : f32
    %8 = vector.broadcast %cst_5 : f32 to vector<8x128xf32>
    %9 = arith.maximumf %7, %8 : vector<8x128xf32>
    %c0_6 = arith.constant 0 : index
    %c0_7 = arith.constant 0 : index
    %10 = vector.load %arg5[%c0_6, %c0_7] : memref<8x128xf32, #tpu.memory_space<vmem>>, vector<8x128xf32>
    tpu.vector_store %arg5[%c0_6, %c0_7], %9 {strides = array<i32>} : memref<8x128xf32, #tpu.memory_space<vmem>>, vector<8x128xf32>,
    return
  }
  func.func @transform_0(%arg0: i32, %arg1: i32) -> (i32, i32) {
    %c0_i32 = arith.constant 0 : i32
    %c0_i32_0 = arith.constant 0 : i32
    return %arg0, %c0_i32 : i32, i32
  }
  func.func @transform_1(%arg0: i32, %arg1: i32) -> (i32, i32) {
    %c0_i32 = arith.constant 0 : i32
    %c0_i32_0 = arith.constant 0 : i32
    return %arg1, %c0_i32 : i32, i32
  }
  func.func @transform_2(%arg0: i32, %arg1: i32) -> (i32, i32) {
    %c0_i32 = arith.constant 0 : i32
    %c0_i32_0 = arith.constant 0 : i32
    return %c0_i32, %arg1 : i32, i32
  }
  func.func @transform_3(%arg0: i32, %arg1: i32) -> (i32, i32) {
    %c0_i32 = arith.constant 0 : i32
    return %arg0, %arg1 : i32, i32
  }
}

</mosaic_0001>

<bundles_post_ra>
// kernel: dense_relu_forward.1
= control target key start
LH: loop header
LB: loop body
LE: loop exit
PB: predicated region body
PF: predicated region fallthrough
CT: control target
= control target key end

     0   :  { %8 = vsyncpa [#allocation3], 0  ;;  %s806_s0 = inlined_call_operand.vmem [shape: f32[16,32], index: 0, kind: input, shape index: {}]   ;;  %s807_s1 = inlined_call_operand.vmem [shape: f32[128,32], index: 1, kind: input, shape index: {}]   ;;  %s808_s2 = inlined_call_operand.vmem [shape: f32[1,128], index: 2, kind: input, shape index: {}]   ;;  %s809_s3 = inlined_call_operand.hbm [shape: f32[16,128], index: 3, kind: output, shape index: {}]  }
   0x1   :  { %10 = vsyncpa [#allocation3 + $0x1], 0  ;;  %s634_s12 = smov 0   ;;  %s636_s13 = smov 0  }
   0x2   :  { %s638_s14 = smov 0   ;;  %s640_s15 = smov 0  }
   0x3   :  { %s642_s16 = smov 0   ;;  %s644_s17 = smov 0  }
   0x4 LB: > { %s430_s18 = sadd.s32 4294967295, %s609_s17   ;;  %s431_s19 = sadd.s32 4294967294, %s609_s17   ;;  %s609_s17 = sphi %s644_s17, %s16_s17   ;;  %s605_s16 = sphi %s642_s16, %s816_s16   ;;  %s601_s15 = sphi %s640_s15, %s815_s15   ;;  %s597_s14 = sphi %s638_s14, %s814_s14   ;;  %s593_s13 = sphi %s636_s13, %s813_s13   ;;  %s589_s12 = sphi %s634_s12, %s812_s12  }
   0x5   : > { %s28_s20 = sadd.s32 1, %s605_s16  ;;  %s115_s21 = sadd.s32 1, %s597_s14 }
   0x6   : > { %p30_p0 = scmp.ge.s32.totalorder %s28_s20, 2  ;;  %p125_p1 = scmp.ne.s32.totalorder %s597_s14, %s593_s13 }
   0x7   : > { %p126_p2 = scmp.eq.s32.totalorder %s430_s18, 1  ;;  %p131_p3 = scmp.ne.s32.totalorder %s593_s13, %s589_s12 }
   0x8   : > { %s818_s20 = smov (%p30_p0, %s28_s20), 0  ;;  %p132_p5 = scmp.eq.s32.totalorder %s431_s19, 1 }
   0x9   : > { %p674_p4 = por %p126_p2, %p125_p1  ;;  %s110_s23 = ssub.s32 %s605_s16, %s818_s20 }
   0xa   : > { %p436_p6 = scmp.ge.s32.totalorder %s609_s17, 1  ;;  %p113_p7 = scmp.eq.s32.totalorder %s110_s23, 0 }
   0xb   : > { %p681_p8 = por %p132_p5, %p131_p3  ;;  %p172_p9 = scmp.lt.s32.totalorder %s609_s17, 3 }
   0xc   : > { %s687_s25 = scalar_select %p113_p7, %s597_s14, %s115_s21  }
   0xd   : > { %p173_p10 = pnand %p436_p6, %p172_p9 }
   0xe   : > { %v219_v0 = vld [vmem:[%s807_s1] sm:$0xff] (!%p173_p10)  ;;  %v220_v1 = vld [vmem:[%s807_s1 + $0x8] sm:$0xff] (!%p173_p10)  ;;  %vm250_vm0 = vcmask (!%p173_p10), 261120   ;;  %v611_v2 = vmov (!%p173_p10), 0.0   ;;  %vm612_vm1 = vmmov (!%p173_p10), 0   ;;  %v221_v4 = vld [vmem:[%s807_s1 + $0x10] sm:$0xff] (!%p173_p10) }
   0xf   : > { %176 = sbr.rel (%p173_p10) target bundleno = 311 (0x137), region = 32  ;;  %454 = vmatprep.subr.bf16.mxu0 (!%p173_p10), %v611_v2  ;;  %v235_v3 = vpack.c.bf16 (!%p173_p10), %v220_v1, %v219_v0  ;;  %470 = vmatprep.mubr.msk.bf16.mxu0 (!%p173_p10), %vm612_vm1, %v611_v2  ;;  %v222_v5 = vld [vmem:[%s807_s1 + $0x18] sm:$0xff] (!%p173_p10)  ;;  %v223_v9 = vld [vmem:[%s807_s1 + $0x20] sm:$0xff] (!%p173_p10)  ;;  %v224_v10 = vld [vmem:[%s807_s1 + $0x28] sm:$0xff] (!%p173_p10)  ;;  %p203_p11 = scmp.lt.s32.totalorder (!%p173_p10), %s601_s15, 1 }
  0x10   : > { %v236_v7 = vpack.c.bf16 (!%p173_p10), %v222_v5, %v221_v4  ;;  %v237_v11 = vpack.c.bf16 (!%p173_p10), %v224_v10, %v223_v9  ;;  %v225_v13 = vld [vmem:[%s807_s1 + $0x30] sm:$0xff] (!%p173_p10)  ;;  %v226_v14 = vld [vmem:[%s807_s1 + $0x38] sm:$0xff] (!%p173_p10)  ;;  %v227_v17 = vld [vmem:[%s807_s1 + $0x40] sm:$0xff] (!%p173_p10)  ;;  %s200_s29 = sand.u32 (!%p173_p10), 1, %s593_s13   ;;  %s442_s6 = sshll.u32 (!%p173_p10), %s601_s15, 7 }
  0x11   : > { %v255_v6 = vsel (!%p173_p10), %vm250_vm0, %v235_v3, 0  ;;  %v238_v15 = vpack.c.bf16 (!%p173_p10), %v226_v14, %v225_v13  ;;  %v228_v18 = vld [vmem:[%s807_s1 + $0x48] sm:$0xff] (!%p173_p10)  ;;  %v229_v21 = vld [vmem:[%s807_s1 + $0x50] sm:$0xff] (!%p173_p10)  ;;  %v230_v22 = vld [vmem:[%s807_s1 + $0x58] sm:$0xff] (!%p173_p10)  ;;  %s437_s30 = sshll.u32 (!%p173_p10), %s200_s29, 3  ;;  %s759_s11 = scalar_lea.hbm (!%p173_p10), %s809_s3, %s442_s6 }
  0x12   : > { %455 = vmatpush3.bf16.xpose.msra.mxu0 (!%p173_p10), %v255_v6  ;;  %v258_v8 = vsel (!%p173_p10), %vm250_vm0, %v236_v7, 0  ;;  %v261_v12 = vsel (!%p173_p10), %vm250_vm0, %v237_v11, 0  ;;  %v239_v19 = vpack.c.bf16 (!%p173_p10), %v228_v18, %v227_v17  ;;  %v240_v23 = vpack.c.bf16 (!%p173_p10), %v230_v22, %v229_v21  ;;  %v231_v25 = vld [vmem:[%s807_s1 + $0x60] sm:$0xff] (!%p173_p10)  ;;  %v232_v26 = vld [vmem:[%s807_s1 + $0x68] sm:$0xff] (!%p173_p10)  ;;  %v233_v29 = vld [vmem:[%s807_s1 + $0x70] sm:$0xff] (!%p173_p10)  ;;  %s202_s7 = scalar_lea.vmem (!%p173_p10), [#allocation2], %s437_s30 }
  0x13   : > { %456 = vmatprep.subr.bf16.mxu0 (!%p173_p10), %v611_v2  ;;  %v264_v16 = vsel (!%p173_p10), %vm250_vm0, %v238_v15, 0  ;;  %v241_v27 = vpack.c.bf16 (!%p173_p10), %v232_v26, %v231_v25  ;;  %v234_v30 = vld [vmem:[%s807_s1 + $0x78] sm:$0xff] (!%p173_p10)  ;;  %v439_v35 = vld [vmem:[%s808_s2] ss:$0 sm:$0xff] (!%p173_p10)  ;;  %s335_s8 = sshll.u32 (!%p173_p10), %s202_s7, 4  ;;  %s321_s18 = scalar_lea.sflag (!%p173_p10), [#allocation3], %s200_s29  ;;  %s761_s8 = int_to_ptr.vmem [resolvable:$true] %s335_s8 }
  0x14   : > { %v267_v20 = vsel (!%p173_p10), %vm250_vm0, %v239_v19, 0  ;;  %v270_v24 = vsel (!%p173_p10), %vm250_vm0, %v240_v23, 0  ;;  %v242_v31 = vpack.c.bf16 (!%p173_p10), %v234_v30, %v233_v29  ;;  %s613_s19 = smov (!%p173_p10), [#allocation2]  }
  0x15   : > { %v273_v28 = vsel (!%p173_p10), %vm250_vm0, %v241_v27, 0 }
  0x16   : > { %s204_s21 = scalar_select %p203_p11, %s601_s15, 1  ;;  %v276_v32 = vsel %vm250_vm0, %v242_v31, 0 }
  0x17   : > { %s531_s15 = scalar_lea.vmem %s761_s8, 128 }
  0x18   : > { %s438_s23 = sshll.u32 %s204_s21, 3  ;;  %p532_p12 = scmp.ne.s32.totalorder %s761_s8, %s531_s15 }
  0x19   : > { %s206_s28 = scalar_lea.vmem %s806_s0, %s438_s23  ;;  %s535_s21 = sshll.u32 %s613_s19, 4  ;;  %s536_s21 = int_to_ptr.vmem [resolvable:$false] %s535_s21 }
  0x1a   : > { %457 = vmatpush3.bf16.xpose.msra.mxu0 %v258_v8  ;;  %v217_v33 = vld [vmem:[%s206_s28] sm:$0xff]  ;;  %p533_p13 = pnand %p532_p12, %p674_p4  ;;  %s537_s23 = scalar_lea.vmem %s536_s21, 256 }
  0x1b   : > { %458 = vmatprep.subr.bf16.mxu0 %v611_v2  ;;  %v218_v34 = vpack.c.bf16 %v217_v33, %v217_v33  ;;  %p538_p1 = scmp.lt.s32.totalorder %s761_s8, %s536_s21  ;;  %p539_p2 = scmp.lt.s32.totalorder %s537_s23, %s531_s15 }
  0x1c   : > { %p534_p0 = pneg %p533_p13 }
  0x1d   : > { %p540_p3 = por %p539_p2, %p538_p1 }
  0x1f   : > { %p541_p5 = pnand %p540_p3, %p534_p0 }
  0x22   : > { %459 = vmatpush3.bf16.xpose.msra.mxu0 %v261_v12 }
  0x23   : > { %460 = vmatprep.subr.bf16.mxu0 %v611_v2 }
  0x2a   : > { %461 = vmatpush3.bf16.xpose.msra.mxu0 %v264_v16 }
  0x2b   : > { %462 = vmatprep.subr.bf16.mxu0 %v611_v2 }
  0x32   : > { %463 = vmatpush3.bf16.xpose.msra.mxu0 %v267_v20 }
  0x33   : > { %464 = vmatprep.subr.bf16.mxu0 %v611_v2 }
  0x3a   : > { %465 = vmatpush3.bf16.xpose.msra.mxu0 %v270_v24 }
  0x3b   : > { %466 = vmatprep.subr.bf16.mxu0 %v611_v2 }
  0x42   : > { %467 = vmatpush3.bf16.xpose.msra.mxu0 %v273_v28 }
  0x43   : > { %468 = vmatprep.subr.bf16.mxu0 %v611_v2 }
  0x4a   : > { %469 = vmatpush3.bf16.xpose.msra.mxu0 %v276_v32 }
  0x51   : > { %471 = vmatmul.mubr.msk.bf16.vlgmr.msra.gmra.mrb[0].mxu0 %vm250_vm0, %v218_v34 }
 0x124   : > { %v312_v36 = vpop.f32.mrb[0].mxu0 }
 0x125   : > { %v313_v37 = vadd.f32 %v439_v35, %v312_v36  ;;  %v472_v38 = vpop.f32.mrb[1].mxu0 }
 0x126   : > { %v315_v39 = vpop.f32.mrb[2].mxu0 }
 0x127   : > { %v318_v40 = vmax.f32 %v313_v37, 0.0  ;;  %v473_v41 = vpop.f32.mrb[3].mxu0 }
 0x129   : > { %319 = vst [vmem:[%s202_s7] sm:$0xff] %v318_v40 }
 0x12a   : > { %544 = shalt.err (!%p541_p5)
}
 0x12b   : > { %s545_s26 = scalar_lea.hbm %s759_s11, 128  ;;  %s549_s29 = scalar_lea.hbm %s809_s3, 256 }
 0x12c   : > { %p546_p6 = scmp.ne.s32.totalorder %s759_s11, %s545_s26  ;;  %p550_p10 = scmp.lt.u32.totalorder %s759_s11, %s809_s3 }
 0x12d   : > { %p551_p11 = scmp.lt.u32.totalorder %s549_s29, %s545_s26  ;;  %p553_p13 = scmp.lt.u32.totalorder %s545_s26, %s759_s11 }
 0x12e   : > { %p547_p7 = pnand %p546_p6, %p674_p4 }
 0x12f   : > { %p552_p12 = por %p551_p11, %p550_p10 }
 0x130   : > { %p548_p9 = pneg %p547_p7 }
 0x131   : > { %p554_p0 = por %p553_p13, %p552_p12 }
 0x133   : > { %p555_p1 = pnand %p554_p0, %p548_p9 }
 0x135   : > { %558 = shalt.err (!%p555_p1)
}
 0x136   : > { %474 = dma.vmem_to_hbm [thread:$0]  (%p674_p4), %s761_s8, 128, %s759_s11, %s321_s18  }
 0x137 PF: > { %p480_p2 = scmp.ge.s32.totalorder %s609_s17, 2  ;;  %s347_s5 = sand.u32 1, %s589_s12  }
 0x138   : > { %s348_s6 = scalar_lea.sflag [#allocation3], %s347_s5 }
 0x139   : > { %p477_p3 = pnand %p480_p2, %p681_p8 }
 0x13b   : > { %584 = dma.done.wait (!%p477_p3), %s348_s6, 128  }
 0x13c   : > { %586 = vsyncadd (!%p477_p3), %s348_s6, 4294967168  ;;  %s16_s17 = sadd.s32 1, %s609_s17   ;;  %s812_s12 = smov %s593_s13 }
 0x13d   : > { %p13_p5 = scmp.ge.s32.totalorder %s16_s17, 4   ;;  %s813_s13 = smov %s597_s14 }
 0x13e   : > { %s814_s14 = smov %s687_s25  ;;  %s815_s15 = smov %s605_s16 }
 0x13f   : > { %s816_s16 = smov %s818_s20  ;;  %15 = sbr.rel (!%p13_p5) target bundleno = 4 (0x4), region = 73 }
 0x146   :  { %353 = vsyncpa [#allocation3], 1 }
 0x147   :  { %355 = vsyncpa [#allocation3 + $0x1], 1 }

</bundles_post_ra>
